<compile_context>
chip_gen: v7x
topology: tpu7x:2x2x1
jax: 0.10.0
libtpu: 0.0.40
codegen_flags: <defaults>
</compile_context>

<pallas_src>
import jax
import jax.numpy as jnp
from jax.experimental import pallas as pl
from jax.experimental.pallas import tpu as pltpu


def _round_up(x, m):
    return (x + m - 1) // m * m


# --------------------------------------------------------------------------
# Phase 1: per-(F,O) tile of  W'^T = W.T + relu(x_avg.T @ t) @ B.T
#   x_avg tile: (S, tf), t: (S, R), B tile: (to, R), W tile: (to, tf)
# --------------------------------------------------------------------------
def wprime_kernel(xavg_ref, t_ref, b_ref, w_ref, out_ref):
    xa = xavg_ref[...].astype(jnp.float32)                 # (S, tf)
    t = t_ref[...].astype(jnp.float32)                     # (S, R)
    # hidden = relu( x_avg.T @ (x_avg @ A.T) )  (reassociated; relu applied
    # after the full product, algebraically identical to the reference).
    hidden = jnp.einsum("sf,sr->fr", xa, t,
                        preferred_element_type=jnp.float32)
    hidden = jnp.maximum(hidden, 0.0)                       # (tf, R)
    bias_mat = jnp.einsum("fr,or->fo", hidden,
                          b_ref[...].astype(jnp.float32),
                          preferred_element_type=jnp.float32)  # (tf, to)
    w_t = w_ref[...].astype(jnp.float32).T                  # (to,tf)->(tf,to)
    out_ref[...] = (w_t + bias_mat).astype(out_ref.dtype)


# --------------------------------------------------------------------------
# Phase 2: tiled GEMM  out = x2d @ W'^T + bias, f32 accumulator, bias folded
# into the accumulator at k == 0.
# --------------------------------------------------------------------------
def gemm_bias_kernel(x_ref, w_ref, bias_ref, out_ref, acc_ref):
    @pl.when(pl.program_id(2) == 0)
    def _():
        acc_ref[...] = jnp.broadcast_to(
            bias_ref[...].astype(jnp.float32), acc_ref.shape)

    acc_ref[...] += jnp.dot(x_ref[...], w_ref[...],
                            preferred_element_type=jnp.float32)

    @pl.when(pl.program_id(2) == pl.num_programs(2) - 1)
    def _():
        out_ref[...] = acc_ref[...].astype(out_ref.dtype)


def custom_linear_forward(x, W, A, B, bias, *, tm=512, tn=512, tk=1024,
                          phase2_vmem_budget=40 * 1024 * 1024):
    batch, seq, in_features = x.shape
    out_features = W.shape[0]
    rank = A.shape[0]
    dtype = x.dtype
    itemsize = jnp.dtype(dtype).itemsize
    if bias is None:
        bias = jnp.zeros((out_features,), dtype=W.dtype)

    # ---------------- Phase 1: build W'^T (F, O) ----------------
    # Bulk batch-mean is mem-bound: do it in XLA (single fused HBM pass).
    x_avg = jnp.mean(x, axis=0)                              # (S, F)
    # Tiny (S, R) projection shared by every F tile: compute once in XLA.
    t = jnp.einsum("sf,rf->sr", x_avg, A,
                   preferred_element_type=jnp.float32).astype(jnp.float32)

    tf = in_features if in_features <= 256 else 256
    # Keep the per-tile (S, tf) x_avg slab modest for very long sequences.
    while tf > 128 and seq * tf * 4 > 8 * 1024 * 1024:
        tf //= 2
    to = out_features if out_features <= 512 else 512
    grid1 = (pl.cdiv(in_features, tf), pl.cdiv(out_features, to))

    w_prime_t = pl.pallas_call(
        wprime_kernel,
        out_shape=jax.ShapeDtypeStruct((in_features, out_features), dtype),
        grid_spec=pltpu.PrefetchScalarGridSpec(
            num_scalar_prefetch=0,
            grid=grid1,
            in_specs=[
                pl.BlockSpec((seq, tf), lambda fi, oi: (0, fi)),    # x_avg
                pl.BlockSpec((seq, rank), lambda fi, oi: (0, 0)),   # t
                pl.BlockSpec((to, rank), lambda fi, oi: (oi, 0)),   # B
                pl.BlockSpec((to, tf), lambda fi, oi: (oi, fi)),    # W
            ],
            out_specs=pl.BlockSpec((tf, to), lambda fi, oi: (fi, oi)),
        ),
        compiler_params=pltpu.CompilerParams(
            dimension_semantics=("parallel", "parallel"),
            vmem_limit_bytes=64 * 1024 * 1024),
    )(x_avg, t, B, W)

    # ---------------- Phase 2: out2d = x2d @ W'^T + bias ----------------
    M = batch * seq
    K = in_features
    N = out_features
    x2d = x.reshape(M, K)
    bias2d = bias.reshape(1, N)

    tm_ = M if M <= tm else tm                       # full-M block or 512

    # Resident-W'^T fast path: whole (K, N) panel + one M stripe in VMEM so x
    # streams through HBM exactly once (traffic floor size(x) + size(out)).
    resident_bytes = (2 * K * N * itemsize + 2 * tm_ * K * itemsize
                      + 2 * tm_ * N * itemsize + tm_ * N * 4
                      + 2 * N * jnp.dtype(bias.dtype).itemsize)
    if resident_bytes <= phase2_vmem_budget:
        tn_, tk_, k_pad = N, K, 0
    else:
        tn_ = N if N <= tn else tn
        if K <= tk:
            tk_, k_pad = K, 0
        else:
            tk_ = 0
            cand = (tk // 128) * 128
            while cand >= 128:
                if K % cand == 0:
                    tk_ = cand
                    break
                cand -= 128
            if tk_ == 0:
                # No multiple-of-128 divisor of K: fall back to zero-padding K.
                tk_ = (tk // 128) * 128 or 128
                k_pad = _round_up(K, tk_) - K
            else:
                k_pad = 0

    w2 = w_prime_t
    if k_pad:
        # Only the contraction axis may be padded, and it must be *zero*
        # padded (garbage along K would corrupt real outputs).  M / N edge
        # blocks need no padding: OOB writes are discarded by Pallas.
        x2d = jnp.pad(x2d, ((0, 0), (0, k_pad)))
        w2 = jnp.pad(w2, ((0, k_pad), (0, 0)))
    K_eff = K + k_pad

    grid = (pl.cdiv(M, tm_), pl.cdiv(N, tn_), K_eff // tk_)

    bytes_accessed = (M * K_eff * itemsize * grid[1]
                      + K_eff * N * itemsize * grid[0]
                      + M * N * itemsize
                      + N * jnp.dtype(bias.dtype).itemsize)

    out2d = pl.pallas_call(
        gemm_bias_kernel,
        out_shape=jax.ShapeDtypeStruct((M, N), dtype),
        grid_spec=pltpu.PrefetchScalarGridSpec(
            num_scalar_prefetch=0,
            grid=grid,
            in_specs=[
                pl.BlockSpec((tm_, tk_), lambda i, j, k: (i, k)),
                pl.BlockSpec((tk_, tn_), lambda i, j, k: (k, j)),
                pl.BlockSpec((1, tn_), lambda i, j, k: (0, j)),
            ],
            out_specs=pl.BlockSpec((tm_, tn_), lambda i, j, k: (i, j)),
            scratch_shapes=[pltpu.VMEM((tm_, tn_), jnp.float32)],
        ),
        compiler_params=pltpu.CompilerParams(
            dimension_semantics=("parallel", "parallel", "arbitrary"),
            vmem_limit_bytes=64 * 1024 * 1024),
        cost_estimate=pl.CostEstimate(
            flops=2 * M * N * K_eff,
            transcendentals=0,
            bytes_accessed=int(bytes_accessed)),
    )(x2d, w2, bias2d)

    return out2d.reshape(batch, seq, N)


def reference_forward(x, W, A, B, bias):
    x_avg = jnp.mean(x, axis=0)
    result = x_avg.T @ x_avg
    hidden = jax.nn.relu(result @ A.T)
    bias_matrix = hidden @ B.T
    w_with_bias = W + bias_matrix.T
    return jnp.einsum("bsf,of->bso", x, w_with_bias) + bias[None, None, :]


if __name__ == "__main__":
    # Small shapes consistent with the module's forward.
    # NOTE: these toy sizes are overhead dominated; the tiling only pays off
    # at realistic F/O/S — do not benchmark at this size.
    batch, seq = 2, 8
    in_features, out_features, rank = 32, 16, 4

    key = jax.random.PRNGKey(0)
    kx, kw, ka, kb, kbias = jax.random.split(key, 5)

    x = jax.random.normal(kx, (batch, seq, in_features), dtype=jnp.float32)
    W = jax.random.normal(kw, (out_features, in_features), dtype=jnp.float32) * 0.1
    # NOTE: PyTorch __init__ sets A = zeros(rank, in_features); we use a small
    # deterministic random A so the low-rank path is actually exercised.
    A = jax.random.normal(ka, (rank, in_features), dtype=jnp.float32) * 0.05
    B = jax.random.normal(kb, (out_features, rank), dtype=jnp.float32) * 0.05
    bias = jax.random.normal(kbias, (out_features,), dtype=jnp.float32) * 0.1

    out = custom_linear_forward(x, W, A, B, bias)
    out = jax.block_until_ready(out)

    ref = reference_forward(x, W, A, B, bias)
    assert out.shape == (batch, seq, out_features)
    assert jnp.allclose(out, ref, atol=1e-4, rtol=1e-4), "mismatch vs reference"

    print("KERNEL_OK")
</pallas_src>

<mosaic_0001>
module attributes {stable_mosaic.version = 11 : i64} {
  func.func @wprime_kernel(%arg0: i32, %arg1: i32, %arg2: memref<8x32xf32, #tpu.memory_space<vmem>>, %arg3: memref<8x4xf32, #tpu.memory_space<vmem>>, %arg4: memref<16x4xf32, #tpu.memory_space<vmem>>, %arg5: memref<16x32xf32, #tpu.memory_space<vmem>>, %arg6: memref<32x16xf32, #tpu.memory_space<vmem>>) attributes {dimension_semantics = [#tpu.dimension_semantics<parallel>, #tpu.dimension_semantics<parallel>], iteration_bounds = array<i64: 1, 1>, scalar_prefetch = 0 : i64, scratch_operands = 0 : i64, tpu.core_type = #tpu.core_type<tc>, window_params = [{transform_indices = @transform_0, window_bounds = array<i64: 8, 32>}, {pipeline_mode = #tpu.pipeline_mode<synchronous>, transform_indices = @transform_1, window_bounds = array<i64: 8, 4>}, {transform_indices = @transform_2, window_bounds = array<i64: 16, 4>}, {transform_indices = @transform_3, window_bounds = array<i64: 16, 32>}, {transform_indices = @transform_4, window_bounds = array<i64: 32, 16>}]} {
    %c0 = arith.constant 0 : index
    %c0_0 = arith.constant 0 : index
    %0 = vector.load %arg2[%c0, %c0_0] : memref<8x32xf32, #tpu.memory_space<vmem>>, vector<8x32xf32>
    %c0_1 = arith.constant 0 : index
    %c0_2 = arith.constant 0 : index
    %1 = vector.load %arg3[%c0_1, %c0_2] : memref<8x4xf32, #tpu.memory_space<vmem>>, vector<8x4xf32>
    "tpu.trace_start"() <{level = 10 : i32, message = "sf,sr->fr"}> : () -> ()
    %cst = arith.constant dense<0.000000e+00> : vector<32x4xf32>
    %2 = tpu.matmul %0, %1, %cst {dimension_numbers = #tpu.dot_dimension_numbers<[0], [0], [1], [1], [0, 1, 1, 1], [], []>} : vector<8x32xf32>, vector<8x4xf32>, vector<32x4xf32> -> vector<32x4xf32>
    "tpu.trace_stop"() : () -> ()
    %cst_3 = arith.constant 0.000000e+00 : f32
    %3 = vector.broadcast %cst_3 : f32 to vector<32x4xf32>
    %4 = arith.maximumf %2, %3 : vector<32x4xf32>
    %c0_4 = arith.constant 0 : index
    %c0_5 = arith.constant 0 : index
    %5 = vector.load %arg4[%c0_4, %c0_5] : memref<16x4xf32, #tpu.memory_space<vmem>>, vector<16x4xf32>
    "tpu.trace_start"() <{level = 10 : i32, message = "fr,or->fo"}> : () -> ()
    %cst_6 = arith.constant dense<0.000000e+00> : vector<32x16xf32>
    %6 = tpu.matmul %4, %5, %cst_6 {dimension_numbers = #tpu.dot_dimension_numbers<[1], [1], [0], [0], [0, 0, 1, 0], [], []>} : vector<32x4xf32>, vector<16x4xf32>, vector<32x16xf32> -> vector<32x16xf32>
    "tpu.trace_stop"() : () -> ()
    %c0_7 = arith.constant 0 : index
    %c0_8 = arith.constant 0 : index
    %7 = vector.load %arg5[%c0_7, %c0_8] : memref<16x32xf32, #tpu.memory_space<vmem>>, vector<16x32xf32>
    %8 = tpu.transpose %7, [1, 0] : vector<16x32xf32> -> vector<32x16xf32>
    %9 = arith.addf %8, %6 : vector<32x16xf32>
    %c0_9 = arith.constant 0 : index
    %c0_10 = arith.constant 0 : index
    %10 = vector.load %arg6[%c0_9, %c0_10] : memref<32x16xf32, #tpu.memory_space<vmem>>, vector<32x16xf32>
    tpu.vector_store %arg6[%c0_9, %c0_10], %9 {strides = array<i32>} : memref<32x16xf32, #tpu.memory_space<vmem>>, vector<32x16xf32>,
    return
  }
  func.func @transform_0(%arg0: i32, %arg1: i32) -> (i32, i32) {
    %c0_i32 = arith.constant 0 : i32
    %c0_i32_0 = arith.constant 0 : i32
    return %c0_i32, %arg0 : i32, i32
  }
  func.func @transform_1(%arg0: i32, %arg1: i32) -> (i32, i32) {
    %c0_i32 = arith.constant 0 : i32
    %c0_i32_0 = arith.constant 0 : i32
    %c0_i32_1 = arith.constant 0 : i32
    return %c0_i32, %c0_i32_0 : i32, i32
  }
  func.func @transform_2(%arg0: i32, %arg1: i32) -> (i32, i32) {
    %c0_i32 = arith.constant 0 : i32
    %c0_i32_0 = arith.constant 0 : i32
    return %arg1, %c0_i32 : i32, i32
  }
  func.func @transform_3(%arg0: i32, %arg1: i32) -> (i32, i32) {
    %c0_i32 = arith.constant 0 : i32
    return %arg1, %arg0 : i32, i32
  }
  func.func @transform_4(%arg0: i32, %arg1: i32) -> (i32, i32) {
    %c0_i32 = arith.constant 0 : i32
    return %arg0, %arg1 : i32, i32
  }
}

</mosaic_0001>

<bundles_post_ra>
// kernel: tpu_custom_call.1
= control target key start
LH: loop header
LB: loop body
LE: loop exit
PB: predicated region body
PF: predicated region fallthrough
CT: control target
= control target key end

     0   :  { %9 = vsyncpa [#allocation3], 0  ;;  %s657_s0 = inlined_call_operand.hbm [shape: f32[8,32], index: 0, kind: input, shape index: {}]   ;;  %s658_s1 = inlined_call_operand.hbm [shape: f32[8,4], index: 1, kind: input, shape index: {}]   ;;  %s659_s2 = inlined_call_operand.hbm [shape: f32[16,4], index: 2, kind: input, shape index: {}]   ;;  %s660_s3 = inlined_call_operand.hbm [shape: f32[16,32], index: 3, kind: input, shape index: {}]   ;;  %s661_s4 = inlined_call_operand.hbm [shape: f32[32,16], index: 4, kind: output, shape index: {}]  }
   0x1   :  { %10 = vsyncpa [#allocation6], 0 }
   0x2   :  { %11 = vsyncpa [#allocation9], 0 }
   0x3   :  { %12 = vsyncpa [#allocation4], 0  ;;  %s546_s15 = smov [#allocation5]   ;;  %s547_s17 = smov [#allocation2]  }
   0x4   :  { %s29_s16 = sshll.u32 %s546_s15, 4  ;;  %s19_s18 = sshll.u32 %s547_s17, 4  ;;  %s30_s16 = int_to_ptr.vmem [resolvable:$true] %s29_s16  ;;  %s20_s18 = int_to_ptr.vmem [resolvable:$true] %s19_s18 }
   0x5   :  { %s428_s21 = scalar_lea.hbm %s658_s1, 128 }
   0x6   :  { %p429_p0 = scmp.ne.s32.totalorder %s658_s1, %s428_s21  ;;  %p432_p1 = scmp.lt.u32.totalorder %s428_s21, %s658_s1 }
   0x8   :  { %p434_p2 = pnand %p432_p1, %p429_p0 }
   0xa   :  { %437 = shalt.err (!%p434_p2)
}
   0xb   :  { %s438_s26 = scalar_lea.vmem %s30_s16, 128  ;;  %p443_p4 = scmp.lt.s32.totalorder %s30_s16, %s30_s16 }
   0xc   :  { %p439_p3 = scmp.ne.s32.totalorder %s30_s16, %s438_s26  ;;  %p444_p5 = scmp.lt.s32.totalorder %s438_s26, %s438_s26 }
   0xe   :  { %p445_p6 = por %p444_p5, %p443_p4 }
  0x10   :  { %p446_p7 = pnand %p445_p6, %p439_p3 }
  0x12   :  { %449 = shalt.err (!%p446_p7)
}
  0x13   :  { %32 = dma.hbm_to_vmem [thread:$0]  %s658_s1, 128, %s30_s16, [#allocation6]  }
  0x14   :  { %s450_s5 = scalar_lea.hbm %s657_s0, 128 }
  0x15   :  { %p451_p8 = scmp.ne.s32.totalorder %s657_s0, %s450_s5  ;;  %p454_p9 = scmp.lt.u32.totalorder %s450_s5, %s657_s0 }
  0x17   :  { %p456_p10 = pnand %p454_p9, %p451_p8 }
  0x19   :  { %459 = shalt.err (!%p456_p10)
}
  0x1a   :  { %s460_s10 = scalar_lea.vmem %s20_s18, 128  ;;  %p465_p12 = scmp.lt.s32.totalorder %s20_s18, %s20_s18 }
  0x1b   :  { %p461_p11 = scmp.ne.s32.totalorder %s20_s18, %s460_s10  ;;  %p466_p13 = scmp.lt.s32.totalorder %s460_s10, %s460_s10 }
  0x1d   :  { %p467_p0 = por %p466_p13, %p465_p12 }
  0x1f   :  { %p468_p1 = pnand %p467_p0, %p461_p11 }
  0x21   :  { %471 = shalt.err (!%p468_p1)
}
  0x22   :  { %22 = dma.hbm_to_vmem [thread:$0]  %s657_s0, 128, %s20_s18, [#allocation3]  }
  0x23   :  { %s548_s12 = smov [#allocation7]   ;;  %s472_s16 = scalar_lea.hbm %s659_s2, 256 }
  0x24   :  { %s38_s13 = sshll.u32 %s548_s12, 4  ;;  %p473_p2 = scmp.ne.s32.totalorder %s659_s2, %s472_s16  ;;  %s39_s13 = int_to_ptr.vmem [resolvable:$true] %s38_s13 }
  0x25   :  { %p476_p3 = scmp.lt.u32.totalorder %s472_s16, %s659_s2 }
  0x27   :  { %p478_p4 = pnand %p476_p3, %p473_p2 }
  0x29   :  { %481 = shalt.err (!%p478_p4)
}
  0x2a   :  { %s482_s22 = scalar_lea.vmem %s39_s13, 256  ;;  %p487_p6 = scmp.lt.s32.totalorder %s39_s13, %s39_s13 }
  0x2b   :  { %p483_p5 = scmp.ne.s32.totalorder %s39_s13, %s482_s22  ;;  %p488_p7 = scmp.lt.s32.totalorder %s482_s22, %s482_s22 }
  0x2d   :  { %p489_p8 = por %p488_p7, %p487_p6 }
  0x2f   :  { %p490_p9 = pnand %p489_p8, %p483_p5 }
  0x31   :  { %493 = shalt.err (!%p490_p9)
}
  0x32   :  { %s549_s0 = smov 128   ;;  %s550_s18 = smov 8  }
  0x33   :  { %44 = dma.hbm_to_vmem [thread:$0]  %s659_s2, 256, %s39_s13, [#allocation6], %s549_s0, %s549_s0, %s550_s18  }
  0x34   :  { %s551_s25 = smov [#allocation8]   ;;  %s494_s29 = scalar_lea.hbm %s660_s3, 256 }
  0x35   :  { %s50_s26 = sshll.u32 %s551_s25, 4  ;;  %p495_p10 = scmp.ne.s32.totalorder %s660_s3, %s494_s29  ;;  %s51_s26 = int_to_ptr.vmem [resolvable:$true] %s50_s26 }
  0x36   :  { %p498_p11 = scmp.lt.u32.totalorder %s494_s29, %s660_s3 }
  0x38   :  { %p500_p12 = pnand %p498_p11, %p495_p10 }
  0x3a   :  { %503 = shalt.err (!%p500_p12)
}
  0x3b   :  { %s504_s8 = scalar_lea.vmem %s51_s26, 256  ;;  %p509_p0 = scmp.lt.s32.totalorder %s51_s26, %s51_s26 }
  0x3c   :  { %p505_p13 = scmp.ne.s32.totalorder %s51_s26, %s504_s8  ;;  %p510_p1 = scmp.lt.s32.totalorder %s504_s8, %s504_s8 }
  0x3e   :  { %p511_p2 = por %p510_p1, %p509_p0 }
  0x40   :  { %p512_p3 = pnand %p511_p2, %p505_p13 }
  0x42   :  { %515 = shalt.err (!%p512_p3)
}
  0x43   :  { %56 = dma.hbm_to_vmem [thread:$0]  %s660_s3, 256, %s51_s26, [#allocation9], %s549_s0, %s549_s0, %s550_s18  }
  0x44   :  { %538 = dma.done.wait [#allocation3], 128  }
  0x45   :  { %539 = vsyncadd [#allocation3], 4294967168 }
  0x46   :  { %540 = dma.done.wait [#allocation6], 384  }
  0x47   :  { %541 = vsyncadd [#allocation6], 4294966912 }
  0x48   :  { %542 = dma.done.wait [#allocation9], 256  }
  0x49   :  { %543 = vsyncadd [#allocation9], 4294967040  ;;  %v69_v0 = vld [vmem:[#allocation2] sm:$0xff]  ;;  %v70_v1 = vld [vmem:[#allocation5] sm:$0xff]  ;;  %vm207_vm0 = vcmask 31744   ;;  %vm103_vm2 = vcmask 64512  }
  0x4a   :  { %71 = vxpose.xlu0.b32.start.end [1/1] (short) (narrow) %v69_v0, 32  ;;  %394 = vmatprep.subr.mxu0 %v70_v1  ;;  %v205_v2 = vld [vmem:[#allocation7] sm:$0xff]  ;;  %v206_v3 = vld [vmem:[#allocation7 + $0x8] sm:$0xff]  ;;  %vm413_vm1 = vmpackc.low %vm207_vm0, %vm207_vm0  ;;  %vm349_vm3 = vcmask 130048   ;;  %s552_s3 = smov [#allocation10]  }
  0x4b   :  { %395 = vmatpush3.msra.mxu0 %v70_v1  ;;  %v412_v4 = vpack.c.bf16 %v206_v3, %v205_v2  ;;  %v311_v9 = vld [vmem:[#allocation8] sm:$0xff]  ;;  %v312_v10 = vld [vmem:[#allocation8 + $0x8] sm:$0xff]  ;;  %s359_s10 = sshll.u32 %s552_s3, 4  ;;  %s360_s10 = int_to_ptr.vmem [resolvable:$true] %s359_s10 }
  0x4c   :  { %s516_s1 = scalar_lea.vmem %s360_s10, 512  ;;  %p521_p5 = scmp.lt.s32.totalorder %s360_s10, %s360_s10 }
  0x4d   :  { %414 = vmatprep.subr.msk.bf16.mxu0 %vm413_vm1, %v412_v4  ;;  %418 = vmatprep.subr.msk.bf16.mxu1 %vm413_vm1, %v412_v4  ;;  %p517_p4 = scmp.ne.s32.totalorder %s360_s10, %s516_s1  ;;  %p522_p6 = scmp.lt.s32.totalorder %s516_s1, %s516_s1 }
  0x4e   :  { %419 = vmatpush3.bf16.xpose.msk.msra.mxu1 %vm413_vm1, %v412_v4 }
  0x4f   :  { %p523_p7 = por %p522_p6, %p521_p5 }
  0x51   :  { %p524_p8 = pnand %p523_p7, %p517_p4 }
  0x57   :  { %313 = vxpose.xlu0.b32.start [1/2] (short) (narrow) %v311_v9, 32 }
  0x5b   :  { %314 = vxpose.xlu0.b32.end [2/2] (short) (narrow) %v312_v10, 32 }
  0xca   :  { %v87_v5 = vpop.trf.xlu0 }
  0xcb   :  { %396 = vmatprep.mubr.msk.f32.mxu0 %vm103_vm2, %v87_v5 }
  0xce   :  { %v88_v6 = vpop.trf.xlu0 }
  0xcf   :  { %397 = vmatmul.mubr.msk.f32.vlgmr.msra.gmra.mrb[0].mxu0 %vm103_vm2, %v88_v6 }
  0xd0   :  { %417 = vmatpush3.bf16.xpose.msk.msra.mxu0 %vm413_vm1, %v412_v4 }
  0xd2   :  { %v89_v7 = vpop.trf.xlu0 }
  0xd3   :  { %399 = vmatprep.mubr.msk.f32.mxu0 %vm103_vm2, %v89_v7 }
  0xd6   :  { %v90_v8 = vpop.trf.xlu0 }
  0xd7   :  { %400 = vmatmul.mubr.msk.f32.gmra.mrb[2].mxu0 %vm103_vm2, %v90_v8 }
  0xda   :  { %v329_v19 = vpop.trf.xlu0 }
  0xde   :  { %v330_v20 = vpop.trf.xlu0 }
  0xe2   :  { %v331_v22 = vpop.trf.xlu0 }
  0xe6   :  { %v332_v26 = vpop.trf.xlu0 }
 0x1a2   :  { %v398_v11 = vpop.f32.mrb[0].mxu0 }
 0x1a3   :  { %v182_v12 = vpop.f32.mrb[1].mxu0  ;;  %v202_v14 = vmax.f32 %v398_v11, 0.0 }
 0x1a4   :  { %v201_v13 = vmax.f32 %v182_v12, 0.0 }
 0x1a6   :  { %406 = vmatprep.mubr.msk.f32.mxu0 %vm207_vm0, %v201_v13 }
 0x1a7   :  { %407 = vmatmul.mubr.msk.f32.vlgmr.msra.gmra.mrb[4].mxu0 %vm207_vm0, %v202_v14 }
 0x1aa   :  { %v401_v15 = vpop.f32.mrb[2].mxu0 }
 0x1ab   :  { %v192_v16 = vpop.f32.mrb[3].mxu0  ;;  %v204_v18 = vmax.f32 %v401_v15, 0.0 }
 0x1ac   :  { %v203_v17 = vmax.f32 %v192_v16, 0.0 }
 0x1ae   :  { %409 = vmatprep.mubr.msk.f32.mxu1 %vm207_vm0, %v203_v17 }
 0x1af   :  { %410 = vmatmul.mubr.msk.f32.vlgmr.msra.gmra.mrb[0].mxu1 %vm207_vm0, %v204_v18 }
 0x27a   :  { %v408_v21 = vpop.f32.mrb[4].mxu0 }
 0x27b   :  { %v346_v23 = vadd.f32 %v408_v21, %v330_v20  ;;  %v292_v24 = vpop.f32.mrb[5].mxu0 }
 0x27c   :  { %v345_v25 = vadd.f32 %v329_v19, %v292_v24 }
 0x27d   :  { %351 = vst.msk [vmem:[#allocation10 + $0x8] sm:$0xff] %vm349_vm3, %v346_v23 }
 0x27e   :  { %350 = vst.msk [vmem:[#allocation10] sm:$0xff] %vm349_vm3, %v345_v25 }
 0x282   :  { %v411_v27 = vpop.f32.mrb[0].mxu1 }
 0x283   :  { %v348_v28 = vadd.f32 %v411_v27, %v332_v26  ;;  %v302_v29 = vpop.f32.mrb[1].mxu1 }
 0x284   :  { %v347_v30 = vadd.f32 %v331_v22, %v302_v29 }
 0x285   :  { %353 = vst.msk [vmem:[#allocation10 + $0x18] sm:$0xff] %vm349_vm3, %v348_v28 }
 0x286   :  { %352 = vst.msk [vmem:[#allocation10 + $0x10] sm:$0xff] %vm349_vm3, %v347_v30 }
 0x287   :  { %527 = shalt.err (!%p524_p8)
}
 0x288   :  { %s528_s13 = scalar_lea.hbm %s661_s4, 512 }
 0x289   :  { %p529_p9 = scmp.ne.s32.totalorder %s661_s4, %s528_s13  ;;  %p532_p10 = scmp.lt.u32.totalorder %s528_s13, %s661_s4 }
 0x28b   :  { %p534_p11 = pnand %p532_p10, %p529_p9 }
 0x28d   :  { %537 = shalt.err (!%p534_p11)
}
 0x28e   :  { %365 = dma.vmem_to_hbm [thread:$0]  %s360_s10, 512, %s661_s4, [#allocation4], %s549_s0, %s549_s0, %s550_s18  }
 0x28f   :  { %544 = dma.done.wait [#allocation4], 512  }
 0x290   :  { %545 = vsyncadd [#allocation4], 4294966784 }
 0x291   :  { %369 = vsyncpa [#allocation3], 1 }
 0x292   :  { %370 = vsyncpa [#allocation6], 1 }
 0x293   :  { %371 = vsyncpa [#allocation9], 1 }
 0x294   :  { %372 = vsyncpa [#allocation4], 1 }

</bundles_post_ra>
